<compile_context>
chip_gen: v6e
topology: v6e:2x2x1
jax: 0.10.0
libtpu: 0.0.40
codegen_flags: <defaults>
</compile_context>

<pallas_src>
import math

import jax
import jax.numpy as jnp
from jax.experimental import pallas as pl
from jax.experimental.pallas import tpu as pltpu


def _round_up(a: int, m: int) -> int:
    return ((a + m - 1) // m) * m


def _vmem_capacity_bytes() -> int:
    try:
        cap = pltpu.get_tpu_info().vmem_capacity_bytes
        if cap:
            return int(cap)
    except Exception:
        pass
    return 128 * 1024 * 1024  # v5e / v6e default


# ---------------------------------------------------------------------------
# Kernel A: (H, H) weight fully VMEM-resident.  Grid = (row tiles,).
# ---------------------------------------------------------------------------
def _residual_linear_kernel(x_ref, w_ref, b_ref, o_ref):
    # x_ref: (TM, Hp)   w_ref: (Hp, Hp)   b_ref: (1, Hp)   o_ref: (TM, Hp)
    x = x_ref[...]
    y = jnp.dot(x, w_ref[...], preferred_element_type=jnp.float32)   # MXU
    y = y + b_ref[...].astype(jnp.float32)                           # bias (f32)
    o_ref[...] = (y + x.astype(jnp.float32)).astype(o_ref.dtype)     # + residual


# ---------------------------------------------------------------------------
# Kernel B: K/N-tiled matmul with accumulator scratch (large H).
# Grid = (row tiles, out-col tiles, reduction tiles) — reduction axis last.
# tile_n == tile_k, so the x block loaded at k == j is exactly the residual
# slice for output block (i, j) — no second x input stream needed.
# ---------------------------------------------------------------------------
def _residual_linear_kernel_tiled(x_ref, w_ref, b_ref, o_ref, acc_ref):
    j = pl.program_id(1)
    k = pl.program_id(2)

    @pl.when(k == 0)
    def _():
        acc_ref[...] = jnp.zeros_like(acc_ref)

    x = x_ref[...]
    acc_ref[...] += jnp.dot(x, w_ref[...], preferred_element_type=jnp.float32)

    @pl.when(k == j)
    def _():
        acc_ref[...] += x.astype(jnp.float32)          # residual, exactly once

    @pl.when(k == pl.num_programs(2) - 1)
    def _():
        y = acc_ref[...] + b_ref[...].astype(jnp.float32)   # bias, exactly once
        o_ref[...] = y.astype(o_ref.dtype)


# ---------------------------------------------------------------------------
# Wrapper
# ---------------------------------------------------------------------------
def residual_add_linear(x, w, b, *, tile_m=None, tile_n=None, tile_k=None,
                        bf16_matmul=False, force_tiled=False):
    """out = (x @ w + b) + x, fused in a single Pallas kernel.

    x: (..., H)   w: (H, H)   b: (H,)
    """
    orig_shape = x.shape
    H = orig_shape[-1]
    N = math.prod(orig_shape[:-1])
    assert w.shape == (H, H) and b.shape == (H,)
    out_dtype = x.dtype

    x2 = x.reshape(N, H)
    w2, b2 = w, b

    # bf16 MXU operands: cast once, outside the kernel (halves DMA + VMEM).
    if bf16_matmul:
        if x2.dtype != jnp.bfloat16:
            x2 = x2.astype(jnp.bfloat16)
        if w2.dtype != jnp.bfloat16:
            w2 = w2.astype(jnp.bfloat16)

    x_item = x2.dtype.itemsize
    w_item = w2.dtype.itemsize
    b_item = jnp.dtype(b2.dtype).itemsize
    o_item = jnp.dtype(out_dtype).itemsize

    vmem_cap = _vmem_capacity_bytes()
    # ~96 MiB on 128-MiB parts (v5e/v6e), ~48 MiB on v7x (64 MiB / TC).
    vmem_limit = min(vmem_cap * 3 // 4, 100 * 1024 * 1024)
    budget = int(vmem_limit * 0.9)

    # Rows: pad to a sublane multiple only (<= 7 rows).  Ragged last row tile
    # is handled by a cdiv grid + masked boundary reads/writes.
    n_pad = _round_up(max(N, 1), 8)

    # ----------------- choose resident (A) vs K/N-tiled (B) ----------------
    force_tiled = force_tiled or (tile_n is not None) or (tile_k is not None)
    h_pad_a = _round_up(H, 128)                       # lane-dense output
    # W + bias assumed double-buffered (no pl.Buffered(1) for portability).
    w_cost_a = 2 * h_pad_a * h_pad_a * w_item + 2 * h_pad_a * b_item

    tm_a = None
    if not force_tiled and w_cost_a <= int(budget * 0.75):
        tm = min(1024, n_pad) if tile_m is None else min(_round_up(tile_m, 8), n_pad)
        per_row = 2 * h_pad_a * (x_item + o_item)     # x in + out, double-buffered
        while tm > 8 and w_cost_a + tm * per_row > budget:
            tm = max(8, _round_up(tm // 2, 8))
        if w_cost_a + tm * per_row <= budget:
            tm_a = tm

    if tm_a is not None:
        # ---------------- Kernel A: resident weight -----------------------
        h_pad = h_pad_a
        pad_r, pad_c = n_pad - N, h_pad - H
        if pad_r or pad_c:
            x2 = jnp.pad(x2, ((0, pad_r), (0, pad_c)))
        if pad_c:
            w2 = jnp.pad(w2, ((0, pad_c), (0, pad_c)))
            b2 = jnp.pad(b2, (0, pad_c))
        b2 = b2.reshape(1, h_pad)

        grid = (pl.cdiv(n_pad, tm_a),)
        cost = pl.CostEstimate(
            flops=2 * n_pad * h_pad * h_pad + 2 * n_pad * h_pad,
            transcendentals=0,
            bytes_accessed=(n_pad * h_pad * (x_item + o_item)
                            + h_pad * h_pad * w_item + h_pad * b_item))
        out = pl.pallas_call(
            _residual_linear_kernel,
            out_shape=jax.ShapeDtypeStruct((n_pad, h_pad), out_dtype),
            grid_spec=pltpu.PrefetchScalarGridSpec(
                num_scalar_prefetch=0,
                grid=grid,
                in_specs=[
                    pl.BlockSpec((tm_a, h_pad), lambda i: (i, 0)),    # x tile
                    pl.BlockSpec((h_pad, h_pad), lambda i: (0, 0)),   # W resident
                    pl.BlockSpec((1, h_pad), lambda i: (0, 0)),       # b resident
                ],
                out_specs=pl.BlockSpec((tm_a, h_pad), lambda i: (i, 0)),
            ),
            compiler_params=pltpu.CompilerParams(
                dimension_semantics=("parallel",),
                vmem_limit_bytes=vmem_limit,
            ),
            cost_estimate=cost,
        )(x2, w2, b2)
    else:
        # ---------------- Kernel B: K/N-tiled reduction --------------------
        if tile_n is not None or tile_k is not None:
            th = tile_n if tile_n is not None else tile_k
            th = _round_up(th, 128)
            h_pad = _round_up(H, th)                   # tile must divide h_pad
        else:
            h_pad = _round_up(H, 256)                  # 256-aligned for 2x256x256 MXU
            th = 512 if h_pad % 512 == 0 else 256

        # Large row tile to amortize streamed-W re-reads, sized to VMEM.
        tm = tile_m
        if tm is None:
            tm = 2048 if vmem_cap >= 96 * 1024 * 1024 else 1024
        tm = min(_round_up(tm, 8), n_pad)
        w_blk = 2 * th * th * w_item + 2 * th * b_item

        def _fits(t):
            return w_blk + t * th * (2 * x_item + 2 * o_item + 4) <= budget

        while tm > 8 and not _fits(tm):
            tm = max(8, _round_up(tm // 2, 8))

        pad_r, pad_c = n_pad - N, h_pad - H
        if pad_r or pad_c:
            x2 = jnp.pad(x2, ((0, pad_r), (0, pad_c)))
        if pad_c:
            w2 = jnp.pad(w2, ((0, pad_c), (0, pad_c)))
            b2 = jnp.pad(b2, (0, pad_c))
        b2 = b2.reshape(1, h_pad)

        n_row_tiles = pl.cdiv(n_pad, tm)
        grid = (n_row_tiles, h_pad // th, h_pad // th)
        cost = pl.CostEstimate(
            flops=2 * n_pad * h_pad * h_pad + 2 * n_pad * h_pad,
            transcendentals=0,
            bytes_accessed=(n_pad * h_pad * (x_item + o_item)
                            + n_row_tiles * h_pad * h_pad * w_item
                            + h_pad * b_item))
        out = pl.pallas_call(
            _residual_linear_kernel_tiled,
            out_shape=jax.ShapeDtypeStruct((n_pad, h_pad), out_dtype),
            grid_spec=pltpu.PrefetchScalarGridSpec(
                num_scalar_prefetch=0,
                grid=grid,
                in_specs=[
                    pl.BlockSpec((tm, th), lambda i, j, k: (i, k)),   # x (matmul + residual)
                    pl.BlockSpec((th, th), lambda i, j, k: (k, j)),   # W
                    pl.BlockSpec((1, th), lambda i, j, k: (0, j)),    # b
                ],
                out_specs=pl.BlockSpec((tm, th), lambda i, j, k: (i, j)),
                scratch_shapes=[pltpu.VMEM((tm, th), jnp.float32)],
            ),
            compiler_params=pltpu.CompilerParams(
                dimension_semantics=("parallel", "parallel", "arbitrary"),
                vmem_limit_bytes=vmem_limit,
            ),
            cost_estimate=cost,
        )(x2, w2, b2)

    if n_pad != N or h_pad != H:
        out = out[:N, :H]
    return out.reshape(orig_shape)


# ---------------------------------------------------------------------------
# Self-test
# ---------------------------------------------------------------------------
if __name__ == "__main__":
    # TODO(synk): `fn` in ResidualAdd is arbitrary; we instantiate it as the
    # canonical nn.Linear(H, H).  Other `fn` choices need their own kernels.
    key = jax.random.PRNGKey(0)

    def make_inputs(lead_shape, H, k):
        kx, kw, kb = jax.random.split(k, 3)
        x = jax.random.normal(kx, lead_shape + (H,), dtype=jnp.float32)
        w = jax.random.normal(kw, (H, H), dtype=jnp.float32) * (1.0 / math.sqrt(H))
        b = jax.random.normal(kb, (H,), dtype=jnp.float32) * 0.01
        return x, w, b

    def reference(x, w, b):
        y = jnp.einsum("...h,hk->...k", x, w, precision=jax.lax.Precision.HIGHEST)
        return y + b + x

    keys = jax.random.split(key, 6)

    # 1) canonical small shape -> resident-weight Kernel A (H padded to 128).
    x, w, b = make_inputs((2, 8), 32, keys[0])
    ref = reference(x, w, b)
    out = residual_add_linear(x, w, b)
    jax.block_until_ready(out)
    assert out.shape == x.shape and out.dtype == x.dtype
    assert jnp.allclose(out, ref, atol=5e-2, rtol=5e-2)

    # 2) multiple row tiles (pipelined 1-D grid).
    out2 = residual_add_linear(x, w, b, tile_m=8)
    jax.block_until_ready(out2)
    assert jnp.allclose(out2, ref, atol=5e-2, rtol=5e-2)

    # 3) ragged rows: N = 21 (padded to 24), tile_m = 16 -> masked last tile.
    x3, w3, b3 = make_inputs((3, 7), 128, keys[1])
    ref3 = reference(x3, w3, b3)
    out3 = residual_add_linear(x3, w3, b3, tile_m=16)
    jax.block_until_ready(out3)
    assert out3.shape == x3.shape
    assert jnp.allclose(out3, ref3, atol=5e-2, rtol=5e-2)

    # 4) bf16 MXU operands (wrapper-side cast), f32 accumulate + bias + residual.
    out4 = residual_add_linear(x, w, b, bf16_matmul=True)
    jax.block_until_ready(out4)
    assert jnp.allclose(out4, ref, atol=1.5e-1, rtol=1e-1)

    # 5) K/N-tiled reduction path (H = 200 -> padded to 256, 2x2 K/N grid),
    #    residual folded into the x-matmul stream at k == j.
    x5, w5, b5 = make_inputs((2, 8), 200, keys[2])
    ref5 = reference(x5, w5, b5)
    out5 = residual_add_linear(x5, w5, b5, tile_m=8, tile_n=128, tile_k=128)
    jax.block_until_ready(out5)
    assert out5.shape == x5.shape
    assert jnp.allclose(out5, ref5, atol=5e-2, rtol=5e-2)

    # 6) tiled path with default (256/512-aligned) tile selection.
    x6, w6, b6 = make_inputs((2, 8), 512, keys[3])
    ref6 = reference(x6, w6, b6)
    out6 = residual_add_linear(x6, w6, b6, force_tiled=True)
    jax.block_until_ready(out6)
    assert out6.shape == x6.shape
    assert jnp.allclose(out6, ref6, atol=5e-2, rtol=5e-2)

    print("KERNEL_OK")
</pallas_src>

<mosaic_0001>
module attributes {stable_mosaic.version = 11 : i64} {
  func.func @_residual_linear_kernel(%arg0: i32, %arg1: memref<16x128xf32, #tpu.memory_space<vmem>>, %arg2: memref<128x128xf32, #tpu.memory_space<vmem>>, %arg3: memref<1x128xf32, #tpu.memory_space<vmem>>, %arg4: memref<16x128xf32, #tpu.memory_space<vmem>>) attributes {dimension_semantics = [#tpu.dimension_semantics<parallel>], iteration_bounds = array<i64: 1>, scalar_prefetch = 0 : i64, scratch_operands = 0 : i64, tpu.core_type = #tpu.core_type<tc>, window_params = [{transform_indices = @transform_0, window_bounds = array<i64: 16, 128>}, {pipeline_mode = #tpu.pipeline_mode<synchronous>, transform_indices = @transform_1, window_bounds = array<i64: 128, 128>}, {pipeline_mode = #tpu.pipeline_mode<synchronous>, transform_indices = @transform_2, window_bounds = array<i64: 1, 128>}, {transform_indices = @transform_3, window_bounds = array<i64: 16, 128>}]} {
    %c0 = arith.constant 0 : index
    %c0_0 = arith.constant 0 : index
    %0 = vector.load %arg1[%c0, %c0_0] : memref<16x128xf32, #tpu.memory_space<vmem>>, vector<16x128xf32>
    %c0_1 = arith.constant 0 : index
    %c0_2 = arith.constant 0 : index
    %1 = vector.load %arg2[%c0_1, %c0_2] : memref<128x128xf32, #tpu.memory_space<vmem>>, vector<128x128xf32>
    %cst = arith.constant dense<0.000000e+00> : vector<16x128xf32>
    %2 = tpu.matmul %0, %1, %cst {dimension_numbers = #tpu.dot_dimension_numbers<[1], [0], [0], [1], [0, 0, 1, 1], [], []>} : vector<16x128xf32>, vector<128x128xf32>, vector<16x128xf32> -> vector<16x128xf32>
    %c0_3 = arith.constant 0 : index
    %c0_4 = arith.constant 0 : index
    %3 = vector.load %arg3[%c0_3, %c0_4] : memref<1x128xf32, #tpu.memory_space<vmem>>, vector<1x128xf32>
    %4 = vector.broadcast %3 : vector<1x128xf32> to vector<16x128xf32>
    %5 = arith.addf %2, %4 : vector<16x128xf32>
    %6 = arith.addf %5, %0 : vector<16x128xf32>
    %c0_5 = arith.constant 0 : index
    %c0_6 = arith.constant 0 : index
    %7 = vector.load %arg4[%c0_5, %c0_6] : memref<16x128xf32, #tpu.memory_space<vmem>>, vector<16x128xf32>
    tpu.vector_store %arg4[%c0_5, %c0_6], %6 {strides = array<i32>} : memref<16x128xf32, #tpu.memory_space<vmem>>, vector<16x128xf32>,
    return
  }
  func.func @transform_0(%arg0: i32) -> (i32, i32) {
    %c0_i32 = arith.constant 0 : i32
    %c0_i32_0 = arith.constant 0 : i32
    return %arg0, %c0_i32 : i32, i32
  }
  func.func @transform_1(%arg0: i32) -> (i32, i32) {
    %c0_i32 = arith.constant 0 : i32
    %c0_i32_0 = arith.constant 0 : i32
    %c0_i32_1 = arith.constant 0 : i32
    return %c0_i32, %c0_i32_0 : i32, i32
  }
  func.func @transform_2(%arg0: i32) -> (i32, i32) {
    %c0_i32 = arith.constant 0 : i32
    %c0_i32_0 = arith.constant 0 : i32
    %c0_i32_1 = arith.constant 0 : i32
    return %c0_i32, %c0_i32_0 : i32, i32
  }
  func.func @transform_3(%arg0: i32) -> (i32, i32) {
    %c0_i32 = arith.constant 0 : i32
    %c0_i32_0 = arith.constant 0 : i32
    return %arg0, %c0_i32 : i32, i32
  }
}

</mosaic_0001>

<bundles_post_ra>
// kernel: tpu_custom_call.1
= control target key start
LH: loop header
LB: loop body
LE: loop exit
PB: predicated region body
PF: predicated region fallthrough
CT: control target
= control target key end

     0   :  { %8 = vsyncpa [#allocation3], 0  ;;  %s336_s0 = inlined_call_operand.hbm [shape: f32[16,128], index: 0, kind: input, shape index: {}]   ;;  %s337_s1 = inlined_call_operand.hbm [shape: f32[128,128], index: 1, kind: input, shape index: {}]   ;;  %s338_s2 = inlined_call_operand.vmem [shape: f32[1,128], index: 2, kind: input, shape index: {}]   ;;  %s339_s3 = inlined_call_operand.hbm [shape: f32[16,128], index: 3, kind: output, shape index: {}]  }
   0x1   :  { %9 = vsyncpa [#allocation6], 0 }
   0x2   :  { %10 = vsyncpa [#allocation4], 0  ;;  %s290_s12 = smov [#allocation2]  }
   0x3   :  { %s16_s13 = sshll.u32 %s290_s12, 4  ;;  %s17_s13 = int_to_ptr.vmem [resolvable:$true] %s16_s13 }
   0x4   :  { %s232_s14 = scalar_lea.vmem %s17_s13, 256  ;;  %p237_p1 = scmp.lt.s32.totalorder %s17_s13, %s17_s13 }
   0x5   :  { %p233_p0 = scmp.ne.s32.totalorder %s17_s13, %s232_s14  ;;  %p238_p2 = scmp.lt.s32.totalorder %s232_s14, %s232_s14 }
   0x7   :  { %p239_p3 = por %p238_p2, %p237_p1 }
   0x9   :  { %p240_p4 = pnand %p239_p3, %p233_p0 }
   0xb   :  { %243 = shalt.err (!%p240_p4)
}
   0xc   :  { %s291_s15 = smov 128   ;;  %s292_s16 = smov 8  }
   0xd   :  { %22 = dma.hbm_to_vmem [thread:$0]  %s336_s0, 256, %s17_s13, [#allocation3], %s291_s15, %s291_s15, %s292_s16  }
   0xe   :  { %s293_s19 = smov [#allocation5]  }
   0xf   :  { %s28_s20 = sshll.u32 %s293_s19, 4  ;;  %s29_s20 = int_to_ptr.vmem [resolvable:$true] %s28_s20 }
  0x10   :  { %s252_s21 = scalar_lea.vmem %s29_s20, 2048  ;;  %p257_p6 = scmp.lt.s32.totalorder %s29_s20, %s29_s20 }
  0x11   :  { %p253_p5 = scmp.ne.s32.totalorder %s29_s20, %s252_s21  ;;  %p258_p7 = scmp.lt.s32.totalorder %s252_s21, %s252_s21 }
  0x13   :  { %p259_p8 = por %p258_p7, %p257_p6 }
  0x15   :  { %p260_p9 = pnand %p259_p8, %p253_p5 }
  0x17   :  { %263 = shalt.err (!%p260_p9)
}
  0x18   :  { %34 = dma.hbm_to_vmem [thread:$0]  %s337_s1, 2048, %s29_s20, [#allocation6], %s291_s15, %s291_s15, %s292_s16  }
  0x19   :  { %284 = dma.done.wait [#allocation3], 256  }
  0x1a   :  { %285 = vsyncadd [#allocation3], 4294967040 }
  0x1b   :  { %286 = dma.done.wait [#allocation6], 2048  }
  0x1c   :  { %287 = vsyncadd [#allocation6], 4294965248  ;;  %v60_v0 = vld [vmem:[#allocation5 + $0x78] sm:$0xff]  ;;  %v59_v1 = vld [vmem:[#allocation5 + $0x70] sm:$0xff]  ;;  %s294_s24 = smov [#allocation7]  }
  0x1d   :  { %184 = vmatprep.subr.mxu0 %v60_v0  ;;  %v58_v2 = vld [vmem:[#allocation5 + $0x68] sm:$0xff]  ;;  %v57_v3 = vld [vmem:[#allocation5 + $0x60] sm:$0xff]  ;;  %v43_v4 = vld [vmem:[#allocation2] sm:$0xff]  ;;  %s152_s25 = sshll.u32 %s294_s24, 4  ;;  %s153_s25 = int_to_ptr.vmem [resolvable:$true] %s152_s25 }
  0x1e   :  { %185 = vmatpush3.msra.mxu0 %v60_v0  ;;  %v56_v5 = vld [vmem:[#allocation5 + $0x58] sm:$0xff]  ;;  %216 = vmatprep.mubr.f32.mxu0 %v43_v4  ;;  %v55_v6 = vld [vmem:[#allocation5 + $0x50] sm:$0xff]  ;;  %v54_v7 = vld [vmem:[#allocation5 + $0x48] sm:$0xff]  ;;  %s264_s26 = scalar_lea.vmem %s153_s25, 256  ;;  %p269_p11 = scmp.lt.s32.totalorder %s153_s25, %s153_s25 }
  0x1f   :  { %186 = vmatprep.subr.mxu0 %v59_v1  ;;  %v53_v8 = vld [vmem:[#allocation5 + $0x40] sm:$0xff]  ;;  %v52_v9 = vld [vmem:[#allocation5 + $0x38] sm:$0xff]  ;;  %v51_v10 = vld [vmem:[#allocation5 + $0x30] sm:$0xff]  ;;  %p265_p10 = scmp.ne.s32.totalorder %s153_s25, %s264_s26  ;;  %p270_p12 = scmp.lt.s32.totalorder %s264_s26, %s264_s26 }
  0x20   :  { %187 = vmatpush3.msra.mxu0 %v59_v1  ;;  %v50_v11 = vld [vmem:[#allocation5 + $0x28] sm:$0xff]  ;;  %v49_v12 = vld [vmem:[#allocation5 + $0x20] sm:$0xff]  ;;  %v48_v13 = vld [vmem:[#allocation5 + $0x18] sm:$0xff] }
  0x21   :  { %188 = vmatprep.subr.mxu0 %v58_v2  ;;  %v47_v14 = vld [vmem:[#allocation5 + $0x10] sm:$0xff]  ;;  %v46_v15 = vld [vmem:[#allocation5 + $0x8] sm:$0xff]  ;;  %v45_v16 = vld [vmem:[#allocation5] sm:$0xff]  ;;  %p271_p13 = por %p270_p12, %p269_p11 }
  0x22   :  { %189 = vmatpush3.msra.mxu0 %v58_v2  ;;  %v44_v17 = vld [vmem:[#allocation2 + $0x8] sm:$0xff]  ;;  %v165_v18 = vld [vmem:[%s338_s2] ss:$0 sm:$0xff] }
  0x23   :  { %190 = vmatprep.subr.mxu0 %v57_v3  ;;  %p272_p0 = pnand %p271_p13, %p265_p10 }
  0x24   :  { %191 = vmatpush3.msra.mxu0 %v57_v3 }
  0x25   :  { %192 = vmatprep.subr.mxu0 %v56_v5 }
  0x26   :  { %193 = vmatpush3.msra.mxu0 %v56_v5 }
  0x27   :  { %194 = vmatprep.subr.mxu0 %v55_v6 }
  0x28   :  { %195 = vmatpush3.msra.mxu0 %v55_v6 }
  0x29   :  { %196 = vmatprep.subr.mxu0 %v54_v7 }
  0x2a   :  { %197 = vmatpush3.msra.mxu0 %v54_v7 }
  0x2b   :  { %198 = vmatprep.subr.mxu0 %v53_v8 }
  0x2c   :  { %199 = vmatpush3.msra.mxu0 %v53_v8 }
  0x2d   :  { %200 = vmatprep.subr.mxu0 %v52_v9 }
  0x2e   :  { %201 = vmatpush3.msra.mxu0 %v52_v9 }
  0x2f   :  { %202 = vmatprep.subr.mxu0 %v51_v10 }
  0x30   :  { %203 = vmatpush3.msra.mxu0 %v51_v10 }
  0x31   :  { %204 = vmatprep.subr.mxu0 %v50_v11 }
  0x32   :  { %205 = vmatpush3.msra.mxu0 %v50_v11 }
  0x33   :  { %206 = vmatprep.subr.mxu0 %v49_v12 }
  0x34   :  { %207 = vmatpush3.msra.mxu0 %v49_v12 }
  0x35   :  { %208 = vmatprep.subr.mxu0 %v48_v13 }
  0x36   :  { %209 = vmatpush3.msra.mxu0 %v48_v13 }
  0x37   :  { %210 = vmatprep.subr.mxu0 %v47_v14 }
  0x38   :  { %211 = vmatpush3.msra.mxu0 %v47_v14 }
  0x39   :  { %212 = vmatprep.subr.mxu0 %v46_v15 }
  0x3a   :  { %213 = vmatpush3.msra.mxu0 %v46_v15 }
  0x3b   :  { %214 = vmatprep.subr.mxu0 %v45_v16 }
  0x3c   :  { %215 = vmatpush3.msra.mxu0 %v45_v16 }
  0x3d   :  { %217 = vmatmul.mubr.f32.vlgmr.msra.gmra.mxu0 %v44_v17 }
  0xfd   :  { %v218_v19 = vpop.f32.mrf.mxu0 }
  0xfe   :  { %v140_v20 = vadd.f32 %v218_v19, %v165_v18 }
  0xff   :  { %v134_v21 = vpop.f32.mrf.mxu0 }
 0x100   :  { %v144_v22 = vadd.f32 %v140_v20, %v44_v17  ;;  %v135_v23 = vadd.f32 %v165_v18, %v134_v21 }
 0x102   :  { %146 = vst [vmem:[#allocation7 + $0x8] sm:$0xff] %v144_v22  ;;  %v143_v24 = vadd.f32 %v135_v23, %v43_v4 }
 0x104   :  { %145 = vst [vmem:[#allocation7] sm:$0xff] %v143_v24 }
 0x105   :  { %275 = shalt.err (!%p272_p0)
}
 0x106   :  { %158 = dma.vmem_to_hbm [thread:$0]  %s153_s25, 256, %s339_s3, [#allocation4], %s291_s15, %s291_s15, %s292_s16  }
 0x107   :  { %288 = dma.done.wait [#allocation4], 256  }
 0x108   :  { %289 = vsyncadd [#allocation4], 4294967040 }
 0x109   :  { %162 = vsyncpa [#allocation3], 1 }
 0x10a   :  { %163 = vsyncpa [#allocation6], 1 }
 0x10b   :  { %164 = vsyncpa [#allocation4], 1 }

</bundles_post_ra>
